<compile_context>
chip_gen: v5e
topology: v5e:2x2
jax: 0.10.0
libtpu: 0.0.40
codegen_flags: <defaults>
</compile_context>

<pallas_src>
import functools

import jax
import jax.numpy as jnp
import numpy as np
from jax.experimental import pallas as pl
from jax.experimental.pallas import tpu as pltpu


def _ntxent_kernel(xi_row_ref, xj_row_ref, xit_col_ref, xjt_col_ref,
                   out_ref, acc_i_ref, acc_j_ref, *,
                   inv_tau: float, sub_const: float):
    """One (row_block, col_block) step of the flash-style NT-Xent loss."""
    j = pl.program_id(1)
    it = jnp.float32(inv_tau)

    @pl.when(j == 0)
    def _():
        acc_i_ref[...] = jnp.zeros_like(acc_i_ref)
        acc_j_ref[...] = jnp.zeros_like(acc_j_ref)

    xi_row = xi_row_ref[...]        # (tm, D) native dtype -> MXU
    xj_row = xj_row_ref[...]        # (tm, D)

    # Group the four MXU tiles by shared RHS (weight-stationary) and fold each
    # dot straight into exp + accumulate so only one (tm, tn) f32 result tile
    # (plus its exp) is live at a time.  Accumulation is lane-wise VPU adds;
    # the single cross-lane reduce happens once per row block at finalization.
    # (For D=128 on v6e/v7x the EUP exp's may be the binding slot, not the
    #  MXU — confirm with a bundle dump before further MXU-side tuning.)
    xit_col = xit_col_ref[...]      # (D, tn) pre-transposed -> NN matmul
    acc_i_ref[...] += jnp.exp(
        jnp.dot(xi_row, xit_col, preferred_element_type=jnp.float32) * it)
    acc_j_ref[...] += jnp.exp(
        jnp.dot(xj_row, xit_col, preferred_element_type=jnp.float32) * it)

    xjt_col = xjt_col_ref[...]      # (D, tn)
    acc_i_ref[...] += jnp.exp(
        jnp.dot(xi_row, xjt_col, preferred_element_type=jnp.float32) * it)
    acc_j_ref[...] += jnp.exp(
        jnp.dot(xj_row, xjt_col, preferred_element_type=jnp.float32) * it)

    @pl.when(j == pl.num_programs(1) - 1)
    def _():
        # sub_const = exp(1/tau) self-term + exact correction for zero-padded
        # columns (each contributes exp(0) = 1 to both row sums).
        sub = jnp.float32(sub_const)
        row_sum_i = jnp.sum(acc_i_ref[...], axis=-1, keepdims=True)  # (tm, 1)
        row_sum_j = jnp.sum(acc_j_ref[...], axis=-1, keepdims=True)  # (tm, 1)
        match = jnp.sum(xi_row.astype(jnp.float32) * xj_row.astype(jnp.float32),
                        axis=-1, keepdims=True)                      # (tm, 1)
        # -log(exp(m/tau) / (rs - sub)) = log(rs - sub) - m/tau, folded for
        # both the xi-row and its matching xj-row (same match term).
        out_ref[...] = (jnp.log(row_sum_i - sub)
                        + jnp.log(row_sum_j - sub)
                        - 2.0 * match * it)


_TILE_CANDIDATES = (1024, 512, 256, 128)


def _vmem_budget_bytes() -> int:
    """Chip-aware VMEM budget (per-TensorCore)."""
    try:
        phys = int(pltpu.get_tpu_info().vmem_capacity_bytes)
    except Exception:
        phys = 64 * 2**20          # conservative: v7x-sized per-TC VMEM
    if phys <= 64 * 2**20:
        return 48 * 2**20          # v7x: leave headroom out of 64 MiB
    return 96 * 2**20              # v5e/v6e: 128 MiB physical


def _tile_need_bytes(tm: int, tn: int, d: int, itemsize: int,
                     col_bufs: int) -> int:
    """Accurate VMEM need: inputs (buffered), accs, live temps, out block."""
    rows = 2 * 2 * tm * d * itemsize          # xi/xj row tiles, double-buffered
    cols = 2 * col_bufs * d * tn * itemsize   # xi^T/xj^T column tiles
    accs = 2 * tm * tn * 4                    # f32 row-sum accumulators (scratch)
    temps = 2 * tm * tn * 4                   # live dot result + exp tile
    outb = 2 * tm * 128 * 4                   # (tm,1) out block, lane-padded, 2 bufs
    return rows + cols + accs + temps + outb


def _pick_tile(b_pad: int, d: int, itemsize: int, budget: int,
               col_bufs: int) -> int:
    fitting = [c for c in _TILE_CANDIDATES
               if b_pad % c == 0
               and _tile_need_bytes(c, c, d, itemsize, col_bufs) <= budget]
    if not fitting:
        # TODO(synk): tile the D (contraction) axis into the grid with an f32
        # similarity scratch instead of hard-failing for very large D.
        raise ValueError(
            f"contrastive_loss: no tile in {_TILE_CANDIDATES} fits the VMEM "
            f"budget ({budget} bytes) for D={d}, itemsize={itemsize}.")
    # Prefer the largest tile that still leaves >= 2 row blocks so the
    # "parallel" row axis can shard across TensorCores (v7x megacore).
    multi = [c for c in fitting if b_pad // c >= 2]
    return multi[0] if multi else fitting[0]


def contrastive_loss(xi, xj, *, tau: float = 1.0, normalize: bool = False,
                     matmul_dtype=None, column_buffering: int = 2):
    """Pallas-TPU NT-Xent contrastive loss. xi, xj: (B, D). Returns scalar."""
    assert xi.shape == xj.shape and xi.ndim == 2
    b, d = xi.shape

    if normalize:
        # Pre-normalize once: both the sim denominator and the positive-pair
        # denominator fall out of a single MXU pass (no norms@norms^T, no
        # full-size divide).
        def _unit(v):
            vf = v.astype(jnp.float32)
            n2 = jnp.sum(vf * vf, axis=-1, keepdims=True)
            return (vf * jax.lax.rsqrt(jnp.maximum(n2, 1e-30))).astype(v.dtype)
        xi = _unit(xi)
        xj = _unit(xj)

    if matmul_dtype is not None:
        # v5e: f32 -> bf16 halves streamed bytes and doubles MXU rate;
        # accumulation stays f32 via preferred_element_type.
        xi = xi.astype(matmul_dtype)
        xj = xj.astype(matmul_dtype)

    # Pad B up to a multiple of 128 with zero rows.  Zero-padded columns add
    # exactly exp(0) = 1 to every row sum; that is subtracted exactly (as a
    # compile-time constant) at finalization.  Padded-row outputs are sliced
    # off below, so no per-step masking is needed.
    b_pad = ((b + 127) // 128) * 128
    n_pad = b_pad - b
    if n_pad:
        xi_p = jnp.pad(xi, ((0, n_pad), (0, 0)))
        xj_p = jnp.pad(xj, ((0, n_pad), (0, 0)))
    else:
        xi_p, xj_p = xi, xj

    itemsize = jnp.dtype(xi_p.dtype).itemsize
    budget = _vmem_budget_bytes()
    tm = _pick_tile(b_pad, d, itemsize, budget, column_buffering)
    tn = tm
    n_row = b_pad // tm
    n_col = b_pad // tn

    # Pre-transposed column operands (HBM-side, O(B*D)): NN matmuls on the
    # MXU, no per-tile XLU transpose inside the hot loop.
    xi_t = xi_p.T
    xj_t = xj_p.T

    need = _tile_need_bytes(tm, tn, d, itemsize, column_buffering)
    vmem_limit = int(min(budget, max(int(1.25 * need), 16 * 2**20)))

    # Deeper buffering (if requested) only on the streamed column operands;
    # rows/output reuse the same block across j and are not re-fetched.
    col_kwargs = ({} if column_buffering == 2
                  else {"pipeline_mode": pl.Buffered(column_buffering)})

    sub_const = float(np.exp(1.0 / float(tau))) + 2.0 * float(n_pad)
    kernel = functools.partial(_ntxent_kernel,
                               inv_tau=1.0 / float(tau),
                               sub_const=sub_const)

    per_row = pl.pallas_call(
        kernel,
        out_shape=jax.ShapeDtypeStruct((b_pad, 1), jnp.float32),
        grid_spec=pltpu.PrefetchScalarGridSpec(
            num_scalar_prefetch=0,
            grid=(n_row, n_col),
            in_specs=[
                pl.BlockSpec((tm, d), lambda i, j: (i, 0)),               # xi rows
                pl.BlockSpec((tm, d), lambda i, j: (i, 0)),               # xj rows
                pl.BlockSpec((d, tn), lambda i, j: (0, j), **col_kwargs),  # xi^T cols
                pl.BlockSpec((d, tn), lambda i, j: (0, j), **col_kwargs),  # xj^T cols
            ],
            out_specs=pl.BlockSpec((tm, 1), lambda i, j: (i, 0)),
            scratch_shapes=[
                pltpu.VMEM((tm, tn), jnp.float32),   # row-sum acc, xi rows
                pltpu.VMEM((tm, tn), jnp.float32),   # row-sum acc, xj rows
            ],
        ),
        compiler_params=pltpu.CompilerParams(
            dimension_semantics=("parallel", "arbitrary"),
            vmem_limit_bytes=vmem_limit,
        ),
    )(xi_p, xj_p, xi_t, xj_t)

    # Each valid entry already folds both the xi-row and xj-row loss terms;
    # padded rows are sliced off (they may hold garbage / NaN by design).
    return jnp.sum(per_row[:b]) / jnp.float32(2 * b)


def _reference(xi, xj, tau=1.0, normalize=False):
    """Pure-JAX reference mirroring the PyTorch forward."""
    xi = xi.astype(jnp.float32)
    xj = xj.astype(jnp.float32)
    x = jnp.concatenate([xi, xj], axis=0)
    sim = x @ x.T
    if normalize:
        n = jnp.linalg.norm(x, axis=1, keepdims=True)
        sim = sim / jnp.maximum(n @ n.T, 1e-16)
    sim = jnp.exp(sim / tau)
    if normalize:
        denom = jnp.linalg.norm(xi, axis=1) * jnp.linalg.norm(xj, axis=1)
        match = jnp.exp(jnp.sum(xi * xj, axis=-1) / denom / tau)
    else:
        match = jnp.exp(jnp.sum(xi * xj, axis=-1) / tau)
    match = jnp.concatenate([match, match], axis=0)
    norm_sum = jnp.exp(jnp.ones(x.shape[0]) / tau)
    return jnp.mean(-jnp.log(match / (jnp.sum(sim, axis=-1) - norm_sum)))


if __name__ == "__main__":
    key = jax.random.PRNGKey(0)
    k1, k2, k3, k4 = jax.random.split(key, 4)

    # Small shape (B=8, D=128): exercises zero-padding up to one 128 tile.
    B, D = 8, 128
    xi = 0.1 * jax.random.normal(k1, (B, D), dtype=jnp.float32)
    xj = 0.1 * jax.random.normal(k2, (B, D), dtype=jnp.float32)

    loss = jax.block_until_ready(contrastive_loss(xi, xj, tau=1.0, normalize=False))
    ref = jax.block_until_ready(_reference(xi, xj, tau=1.0, normalize=False))
    np.testing.assert_allclose(np.asarray(loss), np.asarray(ref), rtol=1e-5, atol=1e-5)

    loss_n = jax.block_until_ready(contrastive_loss(xi, xj, tau=1.0, normalize=True))
    ref_n = jax.block_until_ready(_reference(xi, xj, tau=1.0, normalize=True))
    np.testing.assert_allclose(np.asarray(loss_n), np.asarray(ref_n), rtol=1e-5, atol=1e-5)

    # Non-multiple-of-128 batch with a 2x2 grid (pad-and-correct path).
    B2, D2 = 192, 128
    xi2 = 0.1 * jax.random.normal(k3, (B2, D2), dtype=jnp.float32)
    xj2 = 0.1 * jax.random.normal(k4, (B2, D2), dtype=jnp.float32)
    loss2 = jax.block_until_ready(contrastive_loss(xi2, xj2, tau=0.5, normalize=False))
    ref2 = jax.block_until_ready(_reference(xi2, xj2, tau=0.5, normalize=False))
    np.testing.assert_allclose(np.asarray(loss2), np.asarray(ref2), rtol=1e-4, atol=1e-4)

    print("KERNEL_OK")
</pallas_src>

<mosaic_0001>
module attributes {stable_mosaic.version = 11 : i64} {
  func.func @_ntxent_kernel(%arg0: i32, %arg1: i32, %arg2: memref<128x128xf32, #tpu.memory_space<vmem>>, %arg3: memref<128x128xf32, #tpu.memory_space<vmem>>, %arg4: memref<128x128xf32, #tpu.memory_space<vmem>>, %arg5: memref<128x128xf32, #tpu.memory_space<vmem>>, %arg6: memref<128x1xf32, #tpu.memory_space<vmem>>, %arg7: memref<128x128xf32, #tpu.memory_space<vmem>>, %arg8: memref<128x128xf32, #tpu.memory_space<vmem>>) attributes {dimension_semantics = [#tpu.dimension_semantics<parallel>, #tpu.dimension_semantics<arbitrary>], iteration_bounds = array<i64: 1, 1>, scalar_prefetch = 0 : i64, scratch_operands = 2 : i64, tpu.core_type = #tpu.core_type<tc>, window_params = [{transform_indices = @transform_0, window_bounds = array<i64: 128, 128>}, {transform_indices = @transform_1, window_bounds = array<i64: 128, 128>}, {transform_indices = @transform_2, window_bounds = array<i64: 128, 128>}, {transform_indices = @transform_3, window_bounds = array<i64: 128, 128>}, {transform_indices = @transform_4, window_bounds = array<i64: 128, 1>}]} {
    %c0_i32 = arith.constant 0 : i32
    %0 = arith.cmpi eq, %arg1, %c0_i32 : i32
    %1 = arith.extui %0 : i1 to i32
    %c0_i32_0 = arith.constant 0 : i32
    %2 = arith.cmpi ne, %1, %c0_i32_0 : i32
    scf.if %2 {
      %cst_34 = arith.constant 0.000000e+00 : f32
      %38 = vector.broadcast %cst_34 : f32 to vector<128x128xf32>
      %c0_35 = arith.constant 0 : index
      %c0_36 = arith.constant 0 : index
      %39 = vector.load %arg7[%c0_35, %c0_36] : memref<128x128xf32, #tpu.memory_space<vmem>>, vector<128x128xf32>
      tpu.vector_store %arg7[%c0_35, %c0_36], %38 {strides = array<i32>} : memref<128x128xf32, #tpu.memory_space<vmem>>, vector<128x128xf32>,
      %cst_37 = arith.constant 0.000000e+00 : f32
      %40 = vector.broadcast %cst_37 : f32 to vector<128x128xf32>
      %c0_38 = arith.constant 0 : index
      %c0_39 = arith.constant 0 : index
      %41 = vector.load %arg8[%c0_38, %c0_39] : memref<128x128xf32, #tpu.memory_space<vmem>>, vector<128x128xf32>
      tpu.vector_store %arg8[%c0_38, %c0_39], %40 {strides = array<i32>} : memref<128x128xf32, #tpu.memory_space<vmem>>, vector<128x128xf32>,
    } else {
    }
    %c0 = arith.constant 0 : index
    %c0_1 = arith.constant 0 : index
    %3 = vector.load %arg2[%c0, %c0_1] : memref<128x128xf32, #tpu.memory_space<vmem>>, vector<128x128xf32>
    %c0_2 = arith.constant 0 : index
    %c0_3 = arith.constant 0 : index
    %4 = vector.load %arg3[%c0_2, %c0_3] : memref<128x128xf32, #tpu.memory_space<vmem>>, vector<128x128xf32>
    %c0_4 = arith.constant 0 : index
    %c0_5 = arith.constant 0 : index
    %5 = vector.load %arg4[%c0_4, %c0_5] : memref<128x128xf32, #tpu.memory_space<vmem>>, vector<128x128xf32>
    %c0_6 = arith.constant 0 : index
    %c0_7 = arith.constant 0 : index
    %6 = vector.load %arg7[%c0_6, %c0_7] : memref<128x128xf32, #tpu.memory_space<vmem>>, vector<128x128xf32>
    %cst = arith.constant dense<0.000000e+00> : vector<128x128xf32>
    %7 = tpu.matmul %3, %5, %cst {dimension_numbers = #tpu.dot_dimension_numbers<[1], [0], [0], [1], [0, 0, 1, 1], [], []>} : vector<128x128xf32>, vector<128x128xf32>, vector<128x128xf32> -> vector<128x128xf32>
    %cst_8 = arith.constant 1.000000e+00 : f32
    %8 = vector.broadcast %cst_8 : f32 to vector<128x128xf32>
    %9 = arith.mulf %7, %8 : vector<128x128xf32>
    %10 = math.exp %9 : vector<128x128xf32>
    %11 = arith.addf %6, %10 : vector<128x128xf32>
    %c0_9 = arith.constant 0 : index
    %c0_10 = arith.constant 0 : index
    %12 = vector.load %arg7[%c0_9, %c0_10] : memref<128x128xf32, #tpu.memory_space<vmem>>, vector<128x128xf32>
    tpu.vector_store %arg7[%c0_9, %c0_10], %11 {strides = array<i32>} : memref<128x128xf32, #tpu.memory_space<vmem>>, vector<128x128xf32>,
    %c0_11 = arith.constant 0 : index
    %c0_12 = arith.constant 0 : index
    %13 = vector.load %arg8[%c0_11, %c0_12] : memref<128x128xf32, #tpu.memory_space<vmem>>, vector<128x128xf32>
    %cst_13 = arith.constant dense<0.000000e+00> : vector<128x128xf32>
    %14 = tpu.matmul %4, %5, %cst_13 {dimension_numbers = #tpu.dot_dimension_numbers<[1], [0], [0], [1], [0, 0, 1, 1], [], []>} : vector<128x128xf32>, vector<128x128xf32>, vector<128x128xf32> -> vector<128x128xf32>
    %cst_14 = arith.constant 1.000000e+00 : f32
    %15 = vector.broadcast %cst_14 : f32 to vector<128x128xf32>
    %16 = arith.mulf %14, %15 : vector<128x128xf32>
    %17 = math.exp %16 : vector<128x128xf32>
    %18 = arith.addf %13, %17 : vector<128x128xf32>
    %c0_15 = arith.constant 0 : index
    %c0_16 = arith.constant 0 : index
    %19 = vector.load %arg8[%c0_15, %c0_16] : memref<128x128xf32, #tpu.memory_space<vmem>>, vector<128x128xf32>
    tpu.vector_store %arg8[%c0_15, %c0_16], %18 {strides = array<i32>} : memref<128x128xf32, #tpu.memory_space<vmem>>, vector<128x128xf32>,
    %c0_17 = arith.constant 0 : index
    %c0_18 = arith.constant 0 : index
    %20 = vector.load %arg5[%c0_17, %c0_18] : memref<128x128xf32, #tpu.memory_space<vmem>>, vector<128x128xf32>
    %c0_19 = arith.constant 0 : index
    %c0_20 = arith.constant 0 : index
    %21 = vector.load %arg7[%c0_19, %c0_20] : memref<128x128xf32, #tpu.memory_space<vmem>>, vector<128x128xf32>
    %cst_21 = arith.constant dense<0.000000e+00> : vector<128x128xf32>
    %22 = tpu.matmul %3, %20, %cst_21 {dimension_numbers = #tpu.dot_dimension_numbers<[1], [0], [0], [1], [0, 0, 1, 1], [], []>} : vector<128x128xf32>, vector<128x128xf32>, vector<128x128xf32> -> vector<128x128xf32>
    %cst_22 = arith.constant 1.000000e+00 : f32
    %23 = vector.broadcast %cst_22 : f32 to vector<128x128xf32>
    %24 = arith.mulf %22, %23 : vector<128x128xf32>
    %25 = math.exp %24 : vector<128x128xf32>
    %26 = arith.addf %21, %25 : vector<128x128xf32>
    %c0_23 = arith.constant 0 : index
    %c0_24 = arith.constant 0 : index
    %27 = vector.load %arg7[%c0_23, %c0_24] : memref<128x128xf32, #tpu.memory_space<vmem>>, vector<128x128xf32>
    tpu.vector_store %arg7[%c0_23, %c0_24], %26 {strides = array<i32>} : memref<128x128xf32, #tpu.memory_space<vmem>>, vector<128x128xf32>,
    %c0_25 = arith.constant 0 : index
    %c0_26 = arith.constant 0 : index
    %28 = vector.load %arg8[%c0_25, %c0_26] : memref<128x128xf32, #tpu.memory_space<vmem>>, vector<128x128xf32>
    %cst_27 = arith.constant dense<0.000000e+00> : vector<128x128xf32>
    %29 = tpu.matmul %4, %20, %cst_27 {dimension_numbers = #tpu.dot_dimension_numbers<[1], [0], [0], [1], [0, 0, 1, 1], [], []>} : vector<128x128xf32>, vector<128x128xf32>, vector<128x128xf32> -> vector<128x128xf32>
    %cst_28 = arith.constant 1.000000e+00 : f32
    %30 = vector.broadcast %cst_28 : f32 to vector<128x128xf32>
    %31 = arith.mulf %29, %30 : vector<128x128xf32>
    %32 = math.exp %31 : vector<128x128xf32>
    %33 = arith.addf %28, %32 : vector<128x128xf32>
    %c0_29 = arith.constant 0 : index
    %c0_30 = arith.constant 0 : index
    %34 = vector.load %arg8[%c0_29, %c0_30] : memref<128x128xf32, #tpu.memory_space<vmem>>, vector<128x128xf32>
    tpu.vector_store %arg8[%c0_29, %c0_30], %33 {strides = array<i32>} : memref<128x128xf32, #tpu.memory_space<vmem>>, vector<128x128xf32>,
    %c0_i32_31 = arith.constant 0 : i32
    %35 = arith.cmpi eq, %arg1, %c0_i32_31 : i32
    %36 = arith.extui %35 : i1 to i32
    %cst_32 = arith.constant 1.000000e+00 : f32
    %c0_i32_33 = arith.constant 0 : i32
    %37 = arith.cmpi ne, %36, %c0_i32_33 : i32
    scf.if %37 {
      %c0_34 = arith.constant 0 : index
      %c0_35 = arith.constant 0 : index
      %38 = vector.load %arg7[%c0_34, %c0_35] : memref<128x128xf32, #tpu.memory_space<vmem>>, vector<128x128xf32>
      %cst_36 = arith.constant dense<0.000000e+00> : vector<128xf32>
      %39 = vector.multi_reduction <add>, %38, %cst_36 [1] : vector<128x128xf32> to vector<128xf32>
      %40 = vector.shape_cast %39 : vector<128xf32> to vector<128x1xf32>
      %c0_37 = arith.constant 0 : index
      %c0_38 = arith.constant 0 : index
      %41 = vector.load %arg8[%c0_37, %c0_38] : memref<128x128xf32, #tpu.memory_space<vmem>>, vector<128x128xf32>
      %cst_39 = arith.constant dense<0.000000e+00> : vector<128xf32>
      %42 = vector.multi_reduction <add>, %41, %cst_39 [1] : vector<128x128xf32> to vector<128xf32>
      %43 = vector.shape_cast %42 : vector<128xf32> to vector<128x1xf32>
      %44 = arith.mulf %3, %4 : vector<128x128xf32>
      %cst_40 = arith.constant dense<0.000000e+00> : vector<128xf32>
      %45 = vector.multi_reduction <add>, %44, %cst_40 [1] : vector<128x128xf32> to vector<128xf32>
      %46 = vector.shape_cast %45 : vector<128xf32> to vector<128x1xf32>
      %cst_41 = arith.constant 242.718277 : f32
      %47 = vector.broadcast %cst_41 : f32 to vector<128x1xf32>
      %48 = arith.subf %40, %47 : vector<128x1xf32>
      %49 = math.log %48 : vector<128x1xf32>
      %cst_42 = arith.constant 242.718277 : f32
      %50 = vector.broadcast %cst_42 : f32 to vector<128x1xf32>
      %51 = arith.subf %43, %50 : vector<128x1xf32>
      %52 = math.log %51 : vector<128x1xf32>
      %53 = arith.addf %49, %52 : vector<128x1xf32>
      %cst_43 = arith.constant 2.000000e+00 : f32
      %54 = vector.broadcast %cst_43 : f32 to vector<128x1xf32>
      %55 = arith.mulf %54, %46 : vector<128x1xf32>
      %56 = vector.broadcast %cst_32 : f32 to vector<128x1xf32>
      %57 = arith.mulf %55, %56 : vector<128x1xf32>
      %58 = arith.subf %53, %57 : vector<128x1xf32>
      %c0_44 = arith.constant 0 : index
      %c0_45 = arith.constant 0 : index
      %59 = vector.load %arg6[%c0_44, %c0_45] : memref<128x1xf32, #tpu.memory_space<vmem>>, vector<128x1xf32>
      tpu.vector_store %arg6[%c0_44, %c0_45], %58 {strides = array<i32>} : memref<128x1xf32, #tpu.memory_space<vmem>>, vector<128x1xf32>,
    } else {
    }
    return
  }
  func.func @transform_0(%arg0: i32, %arg1: i32) -> (i32, i32) {
    %c0_i32 = arith.constant 0 : i32
    %c0_i32_0 = arith.constant 0 : i32
    return %arg0, %c0_i32 : i32, i32
  }
  func.func @transform_1(%arg0: i32, %arg1: i32) -> (i32, i32) {
    %c0_i32 = arith.constant 0 : i32
    %c0_i32_0 = arith.constant 0 : i32
    return %arg0, %c0_i32 : i32, i32
  }
  func.func @transform_2(%arg0: i32, %arg1: i32) -> (i32, i32) {
    %c0_i32 = arith.constant 0 : i32
    %c0_i32_0 = arith.constant 0 : i32
    return %c0_i32, %arg1 : i32, i32
  }
  func.func @transform_3(%arg0: i32, %arg1: i32) -> (i32, i32) {
    %c0_i32 = arith.constant 0 : i32
    %c0_i32_0 = arith.constant 0 : i32
    return %c0_i32, %arg1 : i32, i32
  }
  func.func @transform_4(%arg0: i32, %arg1: i32) -> (i32, i32) {
    %c0_i32 = arith.constant 0 : i32
    %c0_i32_0 = arith.constant 0 : i32
    return %arg0, %c0_i32 : i32, i32
  }
}

</mosaic_0001>

<bundles_post_ra>
// kernel: tpu_custom_call.1
= control target key start
LH: loop header
LB: loop body
LE: loop exit
PB: predicated region body
PF: predicated region fallthrough
CT: control target
= control target key end

     0   :  { %9 = vsyncpa [#allocation5], 0  ;;  %s1614_s0 = inlined_call_operand.hbm [shape: f32[128,128], index: 0, kind: input, shape index: {}]   ;;  %s1615_s1 = inlined_call_operand.hbm [shape: f32[128,128], index: 1, kind: input, shape index: {}]   ;;  %s1616_s2 = inlined_call_operand.hbm [shape: f32[128,128], index: 2, kind: input, shape index: {}]   ;;  %s1617_s3 = inlined_call_operand.hbm [shape: f32[128,128], index: 3, kind: input, shape index: {}]   ;;  %s1618_s4 = inlined_call_operand.vmem [shape: f32[128,1], index: 4, kind: output, shape index: {}]  }
   0x1   :  { %10 = vsyncpa [#allocation7], 0 }
   0x2   :  { %11 = vsyncpa [#allocation10], 0  ;;  %s29_s17 = sshll.u32 %s1615_s1, 4  ;;  %s1407_s18 = smov [#allocation6]   ;;  %s30_s17 = int_to_ptr.hbm [resolvable:$true] %s29_s17 }
   0x3   :  { %s31_s19 = sshll.u32 %s1407_s18, 4  ;;  %s16_s22 = sshll.u32 %s1614_s0, 4  ;;  %s32_s19 = int_to_ptr.vmem [resolvable:$true] %s31_s19  ;;  %s17_s22 = int_to_ptr.hbm [resolvable:$true] %s16_s22 }
   0x4   :  { %s1408_s23 = smov 128   ;;  %s1409_s24 = smov 8  }
   0x5   :  { %37 = dma.hbm_to_vmem [thread:$0]  %s30_s17, 2048, %s32_s19, [#allocation7], %s1408_s23, %s1408_s23, %s1409_s24  }
   0x6   :  { %s1410_s25 = smov [#allocation4]   ;;  %s42_s29 = sshll.u32 %s1616_s2, 4  ;;  %s43_s29 = int_to_ptr.hbm [resolvable:$true] %s42_s29 }
   0x7   :  { %s18_s26 = sshll.u32 %s1410_s25, 4  ;;  %s55_s5 = sshll.u32 %s1617_s3, 4  ;;  %s19_s26 = int_to_ptr.vmem [resolvable:$true] %s18_s26  ;;  %s56_s5 = int_to_ptr.hbm [resolvable:$true] %s55_s5 }
   0x8   :  { %24 = dma.hbm_to_vmem [thread:$0]  %s17_s22, 2048, %s19_s26, [#allocation5], %s1408_s23, %s1408_s23, %s1409_s24  }
   0x9   :  { %s1411_s6 = smov [#allocation8]   ;;  %s1412_s0 = smov [#allocation9]  }
   0xa   :  { %s44_s7 = sshll.u32 %s1411_s6, 4  ;;  %s57_s8 = sshll.u32 %s1412_s0, 4  ;;  %s45_s7 = int_to_ptr.vmem [resolvable:$true] %s44_s7  ;;  %s58_s8 = int_to_ptr.vmem [resolvable:$true] %s57_s8 }
   0xb   :  { %50 = dma.hbm_to_vmem [thread:$0]  %s43_s29, 2048, %s45_s7, [#allocation7], %s1408_s23, %s1408_s23, %s1409_s24  }
   0xc   :  { %63 = dma.hbm_to_vmem [thread:$0]  %s56_s5, 2048, %s58_s8, [#allocation10], %s1408_s23, %s1408_s23, %s1409_s24  }
   0xd   :  { %1401 = dma.done.wait [#allocation5], 2048  }
   0xe   :  { %1402 = vsyncadd [#allocation5], 4294965248 }
   0xf   :  { %1403 = dma.done.wait [#allocation7], 4096  }
  0x10   :  { %1404 = vsyncadd [#allocation7], 4294963200 }
  0x11   :  { %1405 = dma.done.wait [#allocation10], 2048  }
  0x12   :  { %1406 = vsyncadd [#allocation10], 4294965248  ;;  %v469_v0 = vld [vmem:[#allocation9 + $0x78] sm:$0xff]  ;;  %v468_v1 = vld [vmem:[#allocation9 + $0x70] sm:$0xff]  ;;  %vm1051_vm0 = vcmask 7168  }
  0x13   :  { %486 = vmatpush.msra.mxu2 %v469_v0  ;;  %631 = vmatpush.msra.mxu3 %v469_v0  ;;  %v163_v2 = vld [vmem:[#allocation8 + $0x78] sm:$0xff]  ;;  %v162_v3 = vld [vmem:[#allocation8 + $0x70] sm:$0xff]  ;;  %v467_v4 = vld [vmem:[#allocation9 + $0x68] sm:$0xff] }
  0x14   :  { %180 = vmatpush.msra.mxu0 %v163_v2  ;;  %325 = vmatpush.msra.mxu1 %v163_v2  ;;  %v161_v5 = vld [vmem:[#allocation8 + $0x68] sm:$0xff]  ;;  %v466_v6 = vld [vmem:[#allocation9 + $0x60] sm:$0xff]  ;;  %v465_v8 = vld [vmem:[#allocation9 + $0x58] sm:$0xff] }
  0x15   :  { %487 = vmatpush.msra.mxu2 %v468_v1  ;;  %632 = vmatpush.msra.mxu3 %v468_v1  ;;  %v160_v7 = vld [vmem:[#allocation8 + $0x60] sm:$0xff]  ;;  %v159_v9 = vld [vmem:[#allocation8 + $0x58] sm:$0xff]  ;;  %v464_v10 = vld [vmem:[#allocation9 + $0x50] sm:$0xff] }
  0x16   :  { %181 = vmatpush.msra.mxu0 %v162_v3  ;;  %326 = vmatpush.msra.mxu1 %v162_v3  ;;  %v158_v11 = vld [vmem:[#allocation8 + $0x50] sm:$0xff]  ;;  %v463_v12 = vld [vmem:[#allocation9 + $0x48] sm:$0xff]  ;;  %v462_v14 = vld [vmem:[#allocation9 + $0x40] sm:$0xff] }
  0x17   :  { %488 = vmatpush.msra.mxu2 %v467_v4  ;;  %633 = vmatpush.msra.mxu3 %v467_v4  ;;  %v157_v13 = vld [vmem:[#allocation8 + $0x48] sm:$0xff]  ;;  %v156_v15 = vld [vmem:[#allocation8 + $0x40] sm:$0xff]  ;;  %v461_v16 = vld [vmem:[#allocation9 + $0x38] sm:$0xff] }
  0x18   :  { %182 = vmatpush.msra.mxu0 %v161_v5  ;;  %327 = vmatpush.msra.mxu1 %v161_v5  ;;  %v155_v17 = vld [vmem:[#allocation8 + $0x38] sm:$0xff]  ;;  %v460_v18 = vld [vmem:[#allocation9 + $0x30] sm:$0xff]  ;;  %v459_v20 = vld [vmem:[#allocation9 + $0x28] sm:$0xff] }
  0x19   :  { %489 = vmatpush.msra.mxu2 %v466_v6  ;;  %634 = vmatpush.msra.mxu3 %v466_v6  ;;  %v154_v19 = vld [vmem:[#allocation8 + $0x30] sm:$0xff]  ;;  %v153_v21 = vld [vmem:[#allocation8 + $0x28] sm:$0xff]  ;;  %v458_v22 = vld [vmem:[#allocation9 + $0x20] sm:$0xff] }
  0x1a   :  { %183 = vmatpush.msra.mxu0 %v160_v7  ;;  %328 = vmatpush.msra.mxu1 %v160_v7  ;;  %v152_v23 = vld [vmem:[#allocation8 + $0x20] sm:$0xff]  ;;  %v457_v24 = vld [vmem:[#allocation9 + $0x18] sm:$0xff]  ;;  %v456_v26 = vld [vmem:[#allocation9 + $0x10] sm:$0xff] }
  0x1b   :  { %490 = vmatpush.msra.mxu2 %v465_v8  ;;  %635 = vmatpush.msra.mxu3 %v465_v8  ;;  %v151_v25 = vld [vmem:[#allocation8 + $0x18] sm:$0xff]  ;;  %v150_v27 = vld [vmem:[#allocation8 + $0x10] sm:$0xff]  ;;  %v455_v28 = vld [vmem:[#allocation9 + $0x8] sm:$0xff] }
  0x1c   :  { %184 = vmatpush.msra.mxu0 %v159_v9  ;;  %329 = vmatpush.msra.mxu1 %v159_v9  ;;  %v149_v29 = vld [vmem:[#allocation8 + $0x8] sm:$0xff]  ;;  %v454_v30 = vld [vmem:[#allocation9] sm:$0xff]  ;;  %v118_v36 = vld [vmem:[#allocation4 + $0x10] sm:$0xff] }
  0x1d   :  { %491 = vmatpush.msra.mxu2 %v464_v10  ;;  %636 = vmatpush.msra.mxu3 %v464_v10  ;;  %v1450_v31 = vld [vmem:[#allocation4] sm:$0xff]  ;;  %v117_v34 = vld [vmem:[#allocation4 + $0x8] sm:$0xff]  ;;  %v134_v37 = vld [vmem:[#allocation6 + $0x10] sm:$0xff] }
  0x1e   :  { %185 = vmatpush.msra.mxu0 %v158_v11  ;;  %330 = vmatpush.msra.mxu1 %v158_v11  ;;  %v1452_v32 = vld [vmem:[#allocation6] sm:$0xff]  ;;  %v133_v35 = vld [vmem:[#allocation6 + $0x8] sm:$0xff]  ;;  %v119_v38 = vld [vmem:[#allocation4 + $0x18] sm:$0xff]  ;;  %v861_v54 = vmul.f32 %v134_v37, %v118_v36 }
  0x1f   :  { %492 = vmatpush.msra.mxu2 %v463_v12  ;;  %637 = vmatpush.msra.mxu3 %v463_v12  ;;  %v148_v33 = vld [vmem:[#allocation8] sm:$0xff]  ;;  %v135_v39 = vld [vmem:[#allocation6 + $0x18] sm:$0xff]  ;;  %v121_v42 = vld [vmem:[#allocation4 + $0x28] sm:$0xff]  ;;  %v860_v55 = vmul.f32 %v133_v35, %v117_v34  ;;  %v859_v56 = vmul.f32 %v1452_v32, %v1450_v31 }
  0x20   :  { %186 = vmatpush.msra.mxu0 %v157_v13  ;;  %331 = vmatpush.msra.mxu1 %v157_v13  ;;  %v120_v40 = vld [vmem:[#allocation4 + $0x20] sm:$0xff]  ;;  %v137_v43 = vld [vmem:[#allocation6 + $0x28] sm:$0xff]  ;;  %v122_v44 = vld [vmem:[#allocation4 + $0x30] sm:$0xff]  ;;  %v862_v61 = vmul.f32 %v135_v39, %v119_v38 }
  0x21   :  { %493 = vmatpush.msra.mxu2 %v462_v14  ;;  %638 = vmatpush.msra.mxu3 %v462_v14  ;;  %v136_v41 = vld [vmem:[#allocation6 + $0x20] sm:$0xff]  ;;  %v138_v45 = vld [vmem:[#allocation6 + $0x30] sm:$0xff]  ;;  %v123_v46 = vld [vmem:[#allocation4 + $0x38] sm:$0xff]  ;;  %v864_v59 = vmul.f32 %v137_v43, %v121_v42 }
  0x22   :  { %187 = vmatpush.msra.mxu0 %v156_v15  ;;  %332 = vmatpush.msra.mxu1 %v156_v15  ;;  %v139_v47 = vld [vmem:[#allocation6 + $0x38] sm:$0xff]  ;;  %v124_v48 = vld [vmem:[#allocation4 + $0x40] sm:$0xff]  ;;  %v125_v50 = vld [vmem:[#allocation4 + $0x48] sm:$0xff]  ;;  %v863_v60 = vmul.f32 %v136_v41, %v120_v40  ;;  %v865_v4 = vmul.f32 %v138_v45, %v122_v44 }
  0x23   :  { %494 = vmatpush.msra.mxu2 %v461_v16  ;;  %639 = vmatpush.msra.mxu3 %v461_v16  ;;  %v140_v49 = vld [vmem:[#allocation6 + $0x40] sm:$0xff]  ;;  %v141_v51 = vld [vmem:[#allocation6 + $0x48] sm:$0xff]  ;;  %v1458_v52 = vld [vmem:[#allocation4 + $0x50] sm:$0xff]  ;;  %v866_v3 = vmul.f32 %v139_v47, %v123_v46 }
  0x24   :  { %188 = vmatpush.msra.mxu0 %v155_v17  ;;  %333 = vmatpush.msra.mxu1 %v155_v17  ;;  %v1460_v53 = vld [vmem:[#allocation6 + $0x50] sm:$0xff]  ;;  %v1468_v57 = vld [vmem:[#allocation4 + $0x58] sm:$0xff]  ;;  %v1476_v62 = vld [vmem:[#allocation4 + $0x60] sm:$0xff]  ;;  %v867_v2 = vmul.f32 %v140_v49, %v124_v48  ;;  %v868_v7 = vmul.f32 %v141_v51, %v125_v50 }
  0x25   :  { %495 = vmatpush.msra.mxu2 %v460_v18  ;;  %640 = vmatpush.msra.mxu3 %v460_v18  ;;  %v1470_v58 = vld [vmem:[#allocation6 + $0x58] sm:$0xff]  ;;  %v1478_v63 = vld [vmem:[#allocation6 + $0x60] sm:$0xff]  ;;  %v1484_v0 = vld [vmem:[#allocation4 + $0x68] sm:$0xff] }
  0x26   :  { %189 = vmatpush.msra.mxu0 %v154_v19  ;;  %334 = vmatpush.msra.mxu1 %v154_v19  ;;  %v1486_v1 = vld [vmem:[#allocation6 + $0x68] sm:$0xff]  ;;  %v1492_v5 = vld [vmem:[#allocation4 + $0x70] sm:$0xff]  ;;  %v1500_v8 = vld [vmem:[#allocation4 + $0x78] sm:$0xff] }
  0x27   :  { %496 = vmatpush.msra.mxu2 %v459_v20  ;;  %641 = vmatpush.msra.mxu3 %v459_v20  ;;  %v1494_v6 = vld [vmem:[#allocation6 + $0x70] sm:$0xff]  ;;  %v1502_v9 = vld [vmem:[#allocation6 + $0x78] sm:$0xff] }
  0x28   :  { %190 = vmatpush.msra.mxu0 %v153_v21  ;;  %335 = vmatpush.msra.mxu1 %v153_v21 }
  0x29   :  { %497 = vmatpush.msra.mxu2 %v458_v22  ;;  %642 = vmatpush.msra.mxu3 %v458_v22 }
  0x2a   :  { %191 = vmatpush.msra.mxu0 %v152_v23  ;;  %336 = vmatpush.msra.mxu1 %v152_v23 }
  0x2b   :  { %498 = vmatpush.msra.mxu2 %v457_v24  ;;  %643 = vmatpush.msra.mxu3 %v457_v24 }
  0x2c   :  { %192 = vmatpush.msra.mxu0 %v151_v25  ;;  %337 = vmatpush.msra.mxu1 %v151_v25 }
  0x2d   :  { %499 = vmatpush.msra.mxu2 %v456_v26  ;;  %644 = vmatpush.msra.mxu3 %v456_v26 }
  0x2e   :  { %193 = vmatpush.msra.mxu0 %v150_v27  ;;  %338 = vmatpush.msra.mxu1 %v150_v27 }
  0x2f   :  { %500 = vmatpush.msra.mxu2 %v455_v28  ;;  %645 = vmatpush.msra.mxu3 %v455_v28 }
  0x30   :  { %194 = vmatpush.msra.mxu0 %v149_v29  ;;  %339 = vmatpush.msra.mxu1 %v149_v29 }
  0x31   :  { %501 = vmatpush.msra.mxu2 %v454_v30  ;;  %646 = vmatpush.msra.mxu3 %v454_v30 }
  0x32   :  { %502 = vmatmul.f32.vlgmr.msra.gmra.mxu2 %v1450_v31  ;;  %647 = vmatmul.f32.vlgmr.msra.gmra.mxu3 %v1452_v32 }
  0x33   :  { %195 = vmatpush.msra.mxu0 %v148_v33  ;;  %340 = vmatpush.msra.mxu1 %v148_v33 }
  0x34   :  { %196 = vmatmul.f32.vlgmr.msra.gmra.mxu0 %v1450_v31  ;;  %341 = vmatmul.f32.vlgmr.msra.gmra.mxu1 %v1452_v32 }
  0x35   :  { %879 = vadd.xlane.f32.xlu1 %v861_v54  ;;  %877 = vadd.xlane.f32.xlu0 %v860_v55 }
  0x36   :  { %875 = vadd.xlane.f32.xlu2 %v859_v56 }
  0x3a   :  { %505 = vmatmul.f32.gmra.mxu2 %v117_v34  ;;  %650 = vmatmul.f32.gmra.mxu3 %v133_v35 }
  0x3c   :  { %199 = vmatmul.f32.gmra.mxu0 %v117_v34  ;;  %344 = vmatmul.f32.gmra.mxu1 %v133_v35 }
  0x3d   :  { %885 = vadd.xlane.f32.xlu1 %v864_v59  ;;  %883 = vadd.xlane.f32.xlu0 %v863_v60 }
  0x3e   :  { %881 = vadd.xlane.f32.xlu2 %v862_v61 }
  0x42   :  { %508 = vmatmul.f32.gmra.mxu2 %v118_v36  ;;  %653 = vmatmul.f32.gmra.mxu3 %v134_v37 }
  0x44   :  { %202 = vmatmul.f32.gmra.mxu0 %v118_v36  ;;  %347 = vmatmul.f32.gmra.mxu1 %v134_v37 }
  0x45   :  { %891 = vadd.xlane.f32.xlu1 %v867_v2  ;;  %889 = vadd.xlane.f32.xlu0 %v866_v3 }
  0x46   :  { %887 = vadd.xlane.f32.xlu2 %v865_v4 }
  0x4a   :  { %511 = vmatmul.f32.gmra.mxu2 %v119_v38  ;;  %656 = vmatmul.f32.gmra.mxu3 %v135_v39 }
  0x4c   :  { %205 = vmatmul.f32.gmra.mxu0 %v119_v38  ;;  %350 = vmatmul.f32.gmra.mxu1 %v135_v39 }
  0x4e   :  { %893 = vadd.xlane.f32.xlu2 %v868_v7 }
  0x52   :  { %514 = vmatmul.f32.gmra.mxu2 %v120_v40  ;;  %659 = vmatmul.f32.gmra.mxu3 %v136_v41 }
  0x54   :  { %208 = vmatmul.f32.gmra.mxu0 %v120_v40  ;;  %353 = vmatmul.f32.gmra.mxu1 %v136_v41 }
  0x5a   :  { %517 = vmatmul.f32.gmra.mxu2 %v121_v42  ;;  %662 = vmatmul.f32.gmra.mxu3 %v137_v43 }
  0x5c   :  { %211 = vmatmul.f32.gmra.mxu0 %v121_v42  ;;  %356 = vmatmul.f32.gmra.mxu1 %v137_v43 }
  0x62   :  { %520 = vmatmul.f32.gmra.mxu2 %v122_v44  ;;  %665 = vmatmul.f32.gmra.mxu3 %v138_v45 }
  0x64   :  { %214 = vmatmul.f32.gmra.mxu0 %v122_v44  ;;  %359 = vmatmul.f32.gmra.mxu1 %v138_v45 }
  0x6a   :  { %523 = vmatmul.f32.gmra.mxu2 %v123_v46  ;;  %668 = vmatmul.f32.gmra.mxu3 %v139_v47 }
  0x6c   :  { %217 = vmatmul.f32.gmra.mxu0 %v123_v46  ;;  %362 = vmatmul.f32.gmra.mxu1 %v139_v47 }
  0x72   :  { %526 = vmatmul.f32.gmra.mxu2 %v124_v48  ;;  %671 = vmatmul.f32.gmra.mxu3 %v140_v49 }
  0x74   :  { %220 = vmatmul.f32.gmra.mxu0 %v124_v48  ;;  %365 = vmatmul.f32.gmra.mxu1 %v140_v49 }
  0x7a   :  { %529 = vmatmul.f32.gmra.mxu2 %v125_v50  ;;  %674 = vmatmul.f32.gmra.mxu3 %v141_v51 }
  0x7c   :  { %223 = vmatmul.f32.gmra.mxu0 %v125_v50  ;;  %368 = vmatmul.f32.gmra.mxu1 %v141_v51 }
  0x82   :  { %532 = vmatmul.f32.gmra.mxu2 %v1458_v52  ;;  %677 = vmatmul.f32.gmra.mxu3 %v1460_v53 }
  0x84   :  { %226 = vmatmul.f32.gmra.mxu0 %v1458_v52  ;;  %371 = vmatmul.f32.gmra.mxu1 %v1460_v53 }
  0x8a   :  { %535 = vmatmul.f32.gmra.mxu2 %v1468_v57  ;;  %680 = vmatmul.f32.gmra.mxu3 %v1470_v58 }
  0x8c   :  { %229 = vmatmul.f32.gmra.mxu0 %v1468_v57  ;;  %374 = vmatmul.f32.gmra.mxu1 %v1470_v58 }
  0x92   :  { %538 = vmatmul.f32.gmra.mxu2 %v1476_v62  ;;  %683 = vmatmul.f32.gmra.mxu3 %v1478_v63 }
  0x94   :  { %232 = vmatmul.f32.gmra.mxu0 %v1476_v62  ;;  %377 = vmatmul.f32.gmra.mxu1 %v1478_v63 }
  0x9a   :  { %541 = vmatmul.f32.gmra.mxu2 %v1484_v0  ;;  %686 = vmatmul.f32.gmra.mxu3 %v1486_v1 }
  0x9c   :  { %235 = vmatmul.f32.gmra.mxu0 %v1484_v0  ;;  %380 = vmatmul.f32.gmra.mxu1 %v1486_v1 }
  0xa2   :  { %544 = vmatmul.f32.gmra.mxu2 %v1492_v5  ;;  %689 = vmatmul.f32.gmra.mxu3 %v1494_v6 }
  0xa4   :  { %238 = vmatmul.f32.gmra.mxu0 %v1492_v5  ;;  %383 = vmatmul.f32.gmra.mxu1 %v1494_v6 }
  0xaa   :  { %547 = vmatmul.f32.gmra.mxu2 %v1500_v8  ;;  %692 = vmatmul.f32.gmra.mxu3 %v1502_v9 }
  0xac   :  { %241 = vmatmul.f32.gmra.mxu0 %v1500_v8  ;;  %386 = vmatmul.f32.gmra.mxu1 %v1502_v9 }
  0xb1   :  { %v197_v10 = vpop.f32.mrf.mxu0  ;;  %v342_v11 = vpop.f32.mrf.mxu1 }
  0xb2   :  { %v245_v12 = vmul.f32 1.442695, %v197_v10  ;;  %v390_v13 = vmul.f32 1.442695, %v342_v11 }
  0xb4   :  { %1113 = vpow2.f32 %v245_v12 }
  0xb5   :  { %v503_v14 = vpop.f32.mrf.mxu2  ;;  %v648_v15 = vpop.f32.mrf.mxu3  ;;  %1115 = vpow2.f32 %v390_v13 }
  0xb6   :  { %v551_v16 = vmul.f32 1.442695, %v503_v14  ;;  %v696_v17 = vmul.f32 1.442695, %v648_v15 }
  0xb8   :  { %1117 = vpow2.f32 %v551_v16 }
  0xb9   :  { %1119 = vpow2.f32 %v696_v17  ;;  %v200_v18 = vpop.f32.mrf.mxu0  ;;  %v345_v19 = vpop.f32.mrf.mxu1 }
  0xba   :  { %v247_v20 = vmul.f32 1.442695, %v200_v18  ;;  %v392_v21 = vmul.f32 1.442695, %v345_v19  ;;  %v1114_v22 = vpop.eup %1113 }
  0xbb   :  { %v1116_v23 = vpop.eup %1115 }
  0xbc   :  { %1121 = vpow2.f32 %v247_v20 }
  0xbd   :  { %v506_v24 = vpop.f32.mrf.mxu2  ;;  %v651_v25 = vpop.f32.mrf.mxu3  ;;  %1123 = vpow2.f32 %v392_v21 }
  0xbe   :  { %v1118_v26 = vpop.eup %1117  ;;  %v553_v27 = vmul.f32 1.442695, %v506_v24  ;;  %v698_v28 = vmul.f32 1.442695, %v651_v25 }
  0xbf   :  { %v1120_v29 = vpop.eup %1119  ;;  %v583_v30 = vadd.f32 %v1118_v26, %v1114_v22 }
  0xc0   :  { %1125 = vpow2.f32 %v553_v27  ;;  %v728_v31 = vadd.f32 %v1120_v29, %v1116_v23 }
  0xc1   :  { %1127 = vpow2.f32 %v698_v28  ;;  %779 = vadd.xlane.f32.xlu0 %v583_v30  ;;  %v203_v32 = vpop.f32.mrf.mxu0  ;;  %v348_v33 = vpop.f32.mrf.mxu1 }
  0xc2   :  { %827 = vadd.xlane.f32.xlu1 %v728_v31  ;;  %v249_v34 = vmul.f32 1.442695, %v203_v32  ;;  %v394_v35 = vmul.f32 1.442695, %v348_v33  ;;  %v1122_v36 = vpop.eup %1121 }
  0xc3   :  { %v1124_v37 = vpop.eup %1123 }
  0xc4   :  { %1129 = vpow2.f32 %v249_v34 }
  0xc5   :  { %v509_v38 = vpop.f32.mrf.mxu2  ;;  %v654_v39 = vpop.f32.mrf.mxu3  ;;  %1131 = vpow2.f32 %v394_v35 }
  0xc6   :  { %v1126_v40 = vpop.eup %1125  ;;  %v555_v41 = vmul.f32 1.442695, %v509_v38  ;;  %v700_v42 = vmul.f32 1.442695, %v654_v39 }
  0xc7   :  { %v1128_v43 = vpop.eup %1127  ;;  %v584_v44 = vadd.f32 %v1126_v40, %v1122_v36 }
  0xc8   :  { %1133 = vpow2.f32 %v555_v41  ;;  %v729_v45 = vadd.f32 %v1128_v43, %v1124_v37 }
  0xc9   :  { %1135 = vpow2.f32 %v700_v42  ;;  %781 = vadd.xlane.f32.xlu0 %v584_v44  ;;  %v206_v46 = vpop.f32.mrf.mxu0  ;;  %v351_v47 = vpop.f32.mrf.mxu1 }
  0xca   :  { %829 = vadd.xlane.f32.xlu2 %v729_v45  ;;  %v251_v48 = vmul.f32 1.442695, %v206_v46  ;;  %v1130_v49 = vpop.eup %1129  ;;  %v396_v61 = vmul.f32 1.442695, %v351_v47 }
  0xcb   :  { %v1132_v50 = vpop.eup %1131 }
  0xcc   :  { %1137 = vpow2.f32 %v251_v48 }
  0xcd   :  { %v512_v51 = vpop.f32.mrf.mxu2  ;;  %v657_v54 = vpop.f32.mrf.mxu3 }
  0xce   :  { %v1134_v55 = vpop.eup %1133  ;;  %v557_v56 = vmul.f32 1.442695, %v512_v51  ;;  %v702_v3 = vmul.f32 1.442695, %v657_v54 }
  0xcf   :  { %v1136_v59 = vpop.eup %1135  ;;  %v585_v60 = vadd.f32 %v1134_v55, %v1130_v49 }
  0xd0   :  { %1139 = vpow2.f32 %v557_v56  ;;  %v730_v2 = vadd.f32 %v1136_v59, %v1132_v50 }
  0xd1   :  { %783 = vadd.xlane.f32.xlu1 %v585_v60  ;;  %v209_v4 = vpop.f32.mrf.mxu0  ;;  %v354_v7 = vpop.f32.mrf.mxu1  ;;  %1141 = vpow2.f32 %v396_v61 }
  0xd2   :  { %831 = vadd.xlane.f32.xlu0 %v730_v2  ;;  %v253_v10 = vmul.f32 1.442695, %v209_v4  ;;  %v1138_v11 = vpop.eup %1137  ;;  %1143 = vpow2.f32 %v702_v3  ;;  %v398_v17 = vmul.f32 1.442695, %v354_v7 }
  0xd4   :  { %1145 = vpow2.f32 %v253_v10 }
  0xd5   :  { %v515_v12 = vpop.f32.mrf.mxu2  ;;  %v660_v13 = vpop.f32.mrf.mxu3 }
  0xd6   :  { %v1140_v14 = vpop.eup %1139  ;;  %v559_v15 = vmul.f32 1.442695, %v515_v12  ;;  %v704_v21 = vmul.f32 1.442695, %v660_v13 }
  0xd7   :  { %v586_v16 = vadd.f32 %v1140_v14, %v1138_v11  ;;  %v1142_v20 = vpop.eup %1141 }
  0xd8   :  { %1147 = vpow2.f32 %v559_v15  ;;  %v1144_v22 = vpop.eup %1143 }
  0xd9   :  { %785 = vadd.xlane.f32.xlu1 %v586_v16  ;;  %v212_v18 = vpop.f32.mrf.mxu0  ;;  %v357_v19 = vpop.f32.mrf.mxu1  ;;  %1149 = vpow2.f32 %v398_v17  ;;  %v731_v29 = vadd.f32 %v1144_v22, %v1142_v20 }
  0xda   :  { %v400_v23 = vmul.f32 1.442695, %v357_v19  ;;  %v1146_v24 = vpop.eup %1145  ;;  %1151 = vpow2.f32 %v704_v21  ;;  %v255_v31 = vmul.f32 1.442695, %v212_v18 }
  0xdc   :  { %1153 = vpow2.f32 %v400_v23 }
  0xdd   :  { %v518_v25 = vpop.f32.mrf.mxu2  ;;  %v663_v26 = vpop.f32.mrf.mxu3 }
  0xde   :  { %v1148_v27 = vpop.eup %1147  ;;  %v706_v28 = vmul.f32 1.442695, %v663_v26  ;;  %v561_v32 = vmul.f32 1.442695, %v518_v25 }
  0xdf   :  { %v587_v30 = vadd.f32 %v1148_v27, %v1146_v24  ;;  %v1150_v36 = vpop.eup %1149 }
  0xe0   :  { %1155 = vpow2.f32 %v706_v28  ;;  %v1152_v38 = vpop.eup %1151 }
  0xe1   :  { %833 = vadd.xlane.f32.xlu1 %v731_v29  ;;  %787 = vadd.xlane.f32.xlu2 %v587_v30  ;;  %v215_v33 = vpop.f32.mrf.mxu0  ;;  %v360_v34 = vpop.f32.mrf.mxu1  ;;  %1157 = vpow2.f32 %v255_v31  ;;  %v732_v45 = vadd.f32 %v1152_v38, %v1150_v36 }
  0xe2   :  { %v257_v35 = vmul.f32 1.442695, %v215_v33  ;;  %v402_v37 = vmul.f32 1.442695, %v360_v34  ;;  %v1154_v39 = vpop.eup %1153  ;;  %1159 = vpow2.f32 %v561_v32 }
  0xe4   :  { %1161 = vpow2.f32 %v257_v35 }
  0xe5   :  { %v521_v40 = vpop.f32.mrf.mxu2  ;;  %v666_v41 = vpop.f32.mrf.mxu3  ;;  %1163 = vpow2.f32 %v402_v37 }
  0xe6   :  { %v563_v42 = vmul.f32 1.442695, %v521_v40  ;;  %v708_v43 = vmul.f32 1.442695, %v666_v41  ;;  %v1156_v44 = vpop.eup %1155 }
  0xe7   :  { %v733_v46 = vadd.f32 %v1156_v44, %v1154_v39  ;;  %v1158_v49 = vpop.eup %1157 }
  0xe8   :  { %1165 = vpow2.f32 %v563_v42  ;;  %v1160_v51 = vpop.eup %1159 }
  0xe9   :  { %1167 = vpow2.f32 %v708_v43  ;;  %835 = vadd.xlane.f32.xlu2 %v732_v45  ;;  %v218_v47 = vpop.f32.mrf.mxu0  ;;  %v363_v48 = vpop.f32.mrf.mxu1  ;;  %837 = vadd.xlane.f32.xlu0 %v733_v46  ;;  %v588_v7 = vadd.f32 %v1160_v51, %v1158_v49 }
  0xea   :  { %v259_v50 = vmul.f32 1.442695, %v218_v47  ;;  %v404_v54 = vmul.f32 1.442695, %v363_v48  ;;  %v1162_v55 = vpop.eup %1161 }
  0xeb   :  { %v1164_v56 = vpop.eup %1163 }
  0xec   :  { %1169 = vpow2.f32 %v259_v50 }
  0xed   :  { %v524_v59 = vpop.f32.mrf.mxu2  ;;  %v669_v60 = vpop.f32.mrf.mxu3  ;;  %1171 = vpow2.f32 %v404_v54 }
  0xee   :  { %v1166_v61 = vpop.eup %1165  ;;  %v565_v2 = vmul.f32 1.442695, %v524_v59  ;;  %v710_v3 = vmul.f32 1.442695, %v669_v60 }
  0xef   :  { %v1168_v4 = vpop.eup %1167  ;;  %v589_v10 = vadd.f32 %v1166_v61, %v1162_v55 }
  0xf0   :  { %1173 = vpow2.f32 %v565_v2  ;;  %v734_v11 = vadd.f32 %v1168_v4, %v1164_v56 }
  0xf1   :  { %1175 = vpow2.f32 %v710_v3  ;;  %789 = vadd.xlane.f32.xlu2 %v588_v7  ;;  %v221_v12 = vpop.f32.mrf.mxu0  ;;  %v366_v13 = vpop.f32.mrf.mxu1  ;;  %791 = vadd.xlane.f32.xlu0 %v589_v10 }
  0xf2   :  { %839 = vadd.xlane.f32.xlu1 %v734_v11  ;;  %v261_v14 = vmul.f32 1.442695, %v221_v12  ;;  %v406_v15 = vmul.f32 1.442695, %v366_v13  ;;  %v1170_v16 = vpop.eup %1169 }
  0xf3   :  { %v1172_v17 = vpop.eup %1171 }
  0xf4   :  { %1177 = vpow2.f32 %v261_v14 }
  0xf5   :  { %v527_v18 = vpop.f32.mrf.mxu2  ;;  %v672_v19 = vpop.f32.mrf.mxu3  ;;  %1179 = vpow2.f32 %v406_v15 }
  0xf6   :  { %v1174_v20 = vpop.eup %1173  ;;  %v567_v21 = vmul.f32 1.442695, %v527_v18  ;;  %v712_v22 = vmul.f32 1.442695, %v672_v19 }
  0xf7   :  { %v1176_v23 = vpop.eup %1175  ;;  %v590_v24 = vadd.f32 %v1174_v20, %v1170_v16 }
  0xf8   :  { %1181 = vpow2.f32 %v567_v21  ;;  %v735_v25 = vadd.f32 %v1176_v23, %v1172_v17  ;;  %v1508_v21 = vpop.xlane.xlu2 %875 }
  0xf9   :  { %1183 = vpow2.f32 %v712_v22  ;;  %v224_v26 = vpop.f32.mrf.mxu0  ;;  %v369_v27 = vpop.f32.mrf.mxu1 }
  0xfa   :  { %841 = vadd.xlane.f32.xlu2 %v735_v25  ;;  %793 = vadd.xlane.f32.xlu1 %v590_v24  ;;  %v263_v28 = vmul.f32 1.442695, %v224_v26  ;;  %v408_v29 = vmul.f32 1.442695, %v369_v27  ;;  %v1178_v30 = vpop.eup %1177 }
  0xfb   :  { %v1180_v31 = vpop.eup %1179 }
  0xfc   :  { %1185 = vpow2.f32 %v263_v28  ;;  %v1510_v28 = vpop.xlane.xlu1 %879 }
  0xfd   :  { %v530_v32 = vpop.f32.mrf.mxu2  ;;  %v675_v33 = vpop.f32.mrf.mxu3  ;;  %1187 = vpow2.f32 %v408_v29 }
  0xfe   :  { %v1182_v34 = vpop.eup %1181  ;;  %v569_v35 = vmul.f32 1.442695, %v530_v32  ;;  %v714_v36 = vmul.f32 1.442695, %v675_v33  ;;  %v1512_v29 = vpop.xlane.xlu0 %877 }
  0xff   :  { %v1184_v37 = vpop.eup %1183  ;;  %v591_v38 = vadd.f32 %v1182_v34, %v1178_v30 }
 0x100   :  { %1189 = vpow2.f32 %v569_v35  ;;  %v736_v39 = vadd.f32 %v1184_v37, %v1180_v31 }
 0x101   :  { %1191 = vpow2.f32 %v714_v36  ;;  %v227_v40 = vpop.f32.mrf.mxu0  ;;  %v372_v41 = vpop.f32.mrf.mxu1 }
 0x102   :  { %843 = vadd.xlane.f32.xlu0 %v736_v39  ;;  %795 = vadd.xlane.f32.xlu2 %v591_v38  ;;  %v265_v42 = vmul.f32 1.442695, %v227_v40  ;;  %v410_v43 = vmul.f32 1.442695, %v372_v41  ;;  %v1186_v44 = vpop.eup %1185 }
 0x103   :  { %v1188_v45 = vpop.eup %1187 }
 0x104   :  { %1193 = vpow2.f32 %v265_v42 }
 0x105   :  { %v533_v46 = vpop.f32.mrf.mxu2  ;;  %v678_v47 = vpop.f32.mrf.mxu3  ;;  %1195 = vpow2.f32 %v410_v43 }
 0x106   :  { %v1190_v48 = vpop.eup %1189  ;;  %v571_v49 = vmul.f32 1.442695, %v533_v46  ;;  %v716_v50 = vmul.f32 1.442695, %v678_v47 }
 0x107   :  { %v1192_v51 = vpop.eup %1191  ;;  %v592_v54 = vadd.f32 %v1190_v48, %v1186_v44  ;;  %v1514_v44 = vpop.xlane.xlu2 %881 }
 0x108   :  { %1197 = vpow2.f32 %v571_v49  ;;  %v737_v55 = vadd.f32 %v1192_v51, %v1188_v45  ;;  %v1516_v48 = vpop.xlane.xlu1 %885  ;;  %v1518_v49 = vpop.xlane.xlu0 %883 }
 0x109   :  { %1199 = vpow2.f32 %v716_v50  ;;  %v230_v56 = vpop.f32.mrf.mxu0  ;;  %v375_v59 = vpop.f32.mrf.mxu1 }
 0x10a   :  { %845 = vadd.xlane.f32.xlu1 %v737_v55  ;;  %797 = vadd.xlane.f32.xlu0 %v592_v54  ;;  %v267_v60 = vmul.f32 1.442695, %v230_v56  ;;  %v412_v61 = vmul.f32 1.442695, %v375_v59  ;;  %v1194_v2 = vpop.eup %1193 }
 0x10b   :  { %v1196_v3 = vpop.eup %1195 }
 0x10c   :  { %1201 = vpow2.f32 %v267_v60 }
 0x10d   :  { %v536_v4 = vpop.f32.mrf.mxu2  ;;  %v681_v7 = vpop.f32.mrf.mxu3  ;;  %1203 = vpow2.f32 %v412_v61 }
 0x10e   :  { %v1198_v10 = vpop.eup %1197  ;;  %v573_v11 = vmul.f32 1.442695, %v536_v4  ;;  %v718_v12 = vmul.f32 1.442695, %v681_v7 }
 0x10f   :  { %v1200_v13 = vpop.eup %1199  ;;  %v593_v14 = vadd.f32 %v1198_v10, %v1194_v2 }
 0x110   :  { %1205 = vpow2.f32 %v573_v11  ;;  %v738_v15 = vadd.f32 %v1200_v13, %v1196_v3 }
 0x111   :  { %1207 = vpow2.f32 %v718_v12  ;;  %v233_v16 = vpop.f32.mrf.mxu0  ;;  %v378_v17 = vpop.f32.mrf.mxu1 }
 0x112   :  { %847 = vadd.xlane.f32.xlu2 %v738_v15  ;;  %799 = vadd.xlane.f32.xlu1 %v593_v14  ;;  %v269_v18 = vmul.f32 1.442695, %v233_v16  ;;  %v414_v19 = vmul.f32 1.442695, %v378_v17  ;;  %v1202_v20 = vpop.eup %1201  ;;  %v1520_v12 = vpop.xlane.xlu2 %887 }
 0x113   :  { %v1204_v22 = vpop.eup %1203  ;;  %v1522_v15 = vpop.xlane.xlu0 %889 }
 0x114   :  { %1209 = vpow2.f32 %v269_v18  ;;  %v1524_v17 = vpop.xlane.xlu1 %891 }
 0x115   :  { %v539_v23 = vpop.f32.mrf.mxu2  ;;  %v684_v24 = vpop.f32.mrf.mxu3  ;;  %1211 = vpow2.f32 %v414_v19 }
 0x116   :  { %v1206_v25 = vpop.eup %1205  ;;  %v575_v26 = vmul.f32 1.442695, %v539_v23  ;;  %v720_v27 = vmul.f32 1.442695, %v684_v24 }
 0x117   :  { %v1208_v30 = vpop.eup %1207  ;;  %v594_v31 = vadd.f32 %v1206_v25, %v1202_v20 }
 0x118   :  { %1213 = vpow2.f32 %v575_v26  ;;  %v739_v32 = vadd.f32 %v1208_v30, %v1204_v22 }
 0x119   :  { %1215 = vpow2.f32 %v720_v27  ;;  %v236_v33 = vpop.f32.mrf.mxu0  ;;  %v381_v34 = vpop.f32.mrf.mxu1 }
 0x11a   :  { %849 = vadd.xlane.f32.xlu0 %v739_v32  ;;  %801 = vadd.xlane.f32.xlu2 %v594_v31  ;;  %v271_v35 = vmul.f32 1.442695, %v236_v33  ;;  %v416_v36 = vmul.f32 1.442695, %v381_v34  ;;  %v1210_v37 = vpop.eup %1209  ;;  %v1526_v32 = vpop.xlane.xlu2 %893 }
 0x11b   :  { %v1212_v38 = vpop.eup %1211 }
 0x11c   :  { %1217 = vpow2.f32 %v271_v35 }
 0x11d   :  { %v542_v39 = vpop.f32.mrf.mxu2  ;;  %v687_v40 = vpop.f32.mrf.mxu3  ;;  %1219 = vpow2.f32 %v416_v36 }
 0x11e   :  { %v1214_v41 = vpop.eup %1213  ;;  %v577_v42 = vmul.f32 1.442695, %v542_v39  ;;  %v722_v43 = vmul.f32 1.442695, %v687_v40  ;;  %v871_v40 = vmul.f32 %v1478_v63, %v1476_v62  ;;  %v874_v62 = vmul.f32 %v1502_v9, %v1500_v8 }
 0x11f   :  { %v1216_v45 = vpop.eup %1215  ;;  %v595_v46 = vadd.f32 %v1214_v41, %v1210_v37  ;;  %v1019_v63 = vmul.f32 2.0, %v1508_v21 }
 0x120   :  { %1221 = vpow2.f32 %v577_v42  ;;  %v740_v47 = vadd.f32 %v1216_v45, %v1212_v38 }
 0x121   :  { %1223 = vpow2.f32 %v722_v43  ;;  %v239_v50 = vpop.f32.mrf.mxu0  ;;  %v384_v51 = vpop.f32.mrf.mxu1 }
 0x122   :  { %851 = vadd.xlane.f32.xlu1 %v740_v47  ;;  %803 = vadd.xlane.f32.xlu0 %v595_v46  ;;  %v273_v54 = vmul.f32 1.442695, %v239_v50  ;;  %v418_v55 = vmul.f32 1.442695, %v384_v51  ;;  %v1218_v56 = vpop.eup %1217 }
 0x123   :  { %v1220_v59 = vpop.eup %1219 }
 0x124   :  { %1225 = vpow2.f32 %v273_v54 }
 0x125   :  { %v545_v60 = vpop.f32.mrf.mxu2  ;;  %v690_v61 = vpop.f32.mrf.mxu3  ;;  %1227 = vpow2.f32 %v418_v55 }
 0x126   :  { %v1222_v2 = vpop.eup %1221  ;;  %v579_v3 = vmul.f32 1.442695, %v545_v60  ;;  %v724_v4 = vmul.f32 1.442695, %v690_v61  ;;  %v869_v60 = vmul.f32 %v1460_v53, %v1458_v52  ;;  %v873_v52 = vmul.f32 %v1494_v6, %v1492_v5 }
 0x127   :  { %v1224_v7 = vpop.eup %1223  ;;  %v596_v10 = vadd.f32 %v1222_v2, %v1218_v56  ;;  %v870_v56 = vmul.f32 %v1470_v58, %v1468_v57 }
 0x128   :  { %1229 = vpow2.f32 %v579_v3  ;;  %v741_v11 = vadd.f32 %v1224_v7, %v1220_v59  ;;  %v872_v7 = vmul.f32 %v1486_v1, %v1484_v0 }
 0x129   :  { %1231 = vpow2.f32 %v724_v4  ;;  %v242_v13 = vpop.f32.mrf.mxu0  ;;  %v387_v14 = vpop.f32.mrf.mxu1 }
 0x12a   :  { %853 = vadd.xlane.f32.xlu2 %v741_v11  ;;  %805 = vadd.xlane.f32.xlu1 %v596_v10  ;;  %v275_v16 = vmul.f32 1.442695, %v242_v13  ;;  %v420_v18 = vmul.f32 1.442695, %v387_v14  ;;  %v1226_v19 = vpop.eup %1225  ;;  %v1020_v10 = vmul.f32 2.0, %v1512_v29 }
 0x12b   :  { %v1228_v20 = vpop.eup %1227 }
 0x12c   :  { %1233 = vpow2.f32 %v275_v16 }
 0x12d   :  { %v548_v22 = vpop.f32.mrf.mxu2  ;;  %v693_v23 = vpop.f32.mrf.mxu3  ;;  %1235 = vpow2.f32 %v420_v18 }
 0x12e   :  { %v1230_v24 = vpop.eup %1229  ;;  %v581_v25 = vmul.f32 1.442695, %v548_v22  ;;  %v726_v26 = vmul.f32 1.442695, %v693_v23 }
 0x12f   :  { %v1232_v27 = vpop.eup %1231  ;;  %v597_v30 = vadd.f32 %v1230_v24, %v1226_v19  ;;  %v1021_v19 = vmul.f32 2.0, %v1510_v28 }
 0x130   :  { %1237 = vpow2.f32 %v581_v25  ;;  %v742_v31 = vadd.f32 %v1232_v27, %v1228_v20 }
 0x131   :  { %1239 = vpow2.f32 %v726_v26 }
 0x132   :  { %855 = vadd.xlane.f32.xlu0 %v742_v31  ;;  %807 = vadd.xlane.f32.xlu2 %v597_v30  ;;  %v1234_v33 = vpop.eup %1233 }
 0x133   :  { %v1236_v35 = vpop.eup %1235 }
 0x134   :  { %v780_v34 = vpop.xlane.xlu0 %779 }
 0x135   :  { %v828_v36 = vpop.xlane.xlu1 %827  ;;  %v1075_v37 = vadd.f32 -242.71828, %v780_v34  ;;  %v1022_v34 = vmul.f32 2.0, %v1514_v44  ;;  %v1023_v44 = vmul.f32 2.0, %v1518_v49 }
 0x136   :  { %v1238_v38 = vpop.eup %1237  ;;  %v1091_v39 = vadd.f32 -242.71828, %v828_v36 }
 0x137   :  { %v1240_v41 = vpop.eup %1239  ;;  %1241 = vlog2.f32 %v1075_v37  ;;  %v598_v42 = vadd.f32 %v1238_v38, %v1234_v33 }
 0x138   :  { %1243 = vlog2.f32 %v1091_v39  ;;  %v743_v43 = vadd.f32 %v1240_v41, %v1236_v35 }
 0x13a   :  { %857 = vadd.xlane.f32.xlu1 %v743_v43  ;;  %899 = vadd.xlane.f32.xlu2 %v871_v40 }
 0x13b   :  { %809 = vadd.xlane.f32.xlu0 %v598_v42 }
 0x13c   :  { %v782_v45 = vpop.xlane.xlu0 %781 }
 0x13d   :  { %v1242_v46 = vpop.eup %1241  ;;  %v830_v47 = vpop.xlane.xlu2 %829  ;;  %v1076_v50 = vadd.f32 -242.71828, %v782_v45 }
 0x13e   :  { %v1244_v51 = vpop.eup %1243  ;;  %v924_v54 = vmul.f32 0.6931472, %v1242_v46  ;;  %v1092_v55 = vadd.f32 -242.71828, %v830_v47 }
 0x13f   :  { %v972_v59 = vmul.f32 0.6931472, %v1244_v51  ;;  %1245 = vlog2.f32 %v1076_v50 }
 0x140   :  { %1247 = vlog2.f32 %v1092_v55 }
 0x141   :  { %v1003_v61 = vadd.f32 %v972_v59, %v924_v54 }
 0x142   :  { %897 = vadd.xlane.f32.xlu1 %v870_v56  ;;  %905 = vadd.xlane.f32.xlu2 %v874_v62 }
 0x143   :  { %v1035_v2 = vsub.f32 %v1003_v61, %v1019_v63  ;;  %895 = vadd.xlane.f32.xlu0 %v869_v60 }
 0x144   :  { %v784_v3 = vpop.xlane.xlu1 %783 }
 0x145   :  { %v1246_v4 = vpop.eup %1245  ;;  %1052 = vst.msk [vmem:[%s1618_s4] sm:$0xff] %vm1051_vm0, %v1035_v2  ;;  %v832_v57 = vpop.xlane.xlu0 %831  ;;  %v1077_v58 = vadd.f32 -242.71828, %v784_v3 }
 0x146   :  { %v1248_v8 = vpop.eup %1247  ;;  %v926_v9 = vmul.f32 0.6931472, %v1246_v4  ;;  %v1093_v21 = vadd.f32 -242.71828, %v832_v57  ;;  %v1024_v57 = vmul.f32 2.0, %v1516_v48 }
 0x147   :  { %v974_v53 = vmul.f32 0.6931472, %v1248_v8  ;;  %1249 = vlog2.f32 %v1077_v58 }
 0x148   :  { %1251 = vlog2.f32 %v1093_v21 }
 0x149   :  { %v1004_v11 = vadd.f32 %v974_v53, %v926_v9  ;;  %v1025_v9 = vmul.f32 2.0, %v1520_v12 }
 0x14a   :  { %903 = vadd.xlane.f32.xlu1 %v873_v52 }
 0x14b   :  { %v1036_v13 = vsub.f32 %v1004_v11, %v1020_v10  ;;  %901 = vadd.xlane.f32.xlu0 %v872_v7 }
 0x14c   :  { %v786_v14 = vpop.xlane.xlu1 %785 }
 0x14d   :  { %v1250_v16 = vpop.eup %1249  ;;  %1053 = vst.msk [vmem:[%s1618_s4 + $0x8] sm:$0xff] %vm1051_vm0, %v1036_v13  ;;  %v1078_v1 = vadd.f32 -242.71828, %v786_v14 }
 0x14e   :  { %v1252_v5 = vpop.eup %1251  ;;  %v928_v6 = vmul.f32 0.6931472, %v1250_v16 }
 0x14f   :  { %v976_v18 = vmul.f32 0.6931472, %v1252_v5  ;;  %1253 = vlog2.f32 %v1078_v1  ;;  %v1026_v5 = vmul.f32 2.0, %v1522_v15 }
 0x151   :  { %v1005_v0 = vadd.f32 %v976_v18, %v928_v6 }
 0x153   :  { %v1037_v20 = vsub.f32 %v1005_v0, %v1021_v19 }
 0x154   :  { %v834_v29 = vpop.xlane.xlu1 %833  ;;  %v788_v22 = vpop.xlane.xlu2 %787 }
 0x155   :  { %1054 = vst.msk [vmem:[%s1618_s4 + $0x10] sm:$0xff] %vm1051_vm0, %v1037_v20  ;;  %v1094_v23 = vadd.f32 -242.71828, %v834_v29  ;;  %v1079_v24 = vadd.f32 -242.71828, %v788_v22  ;;  %v1254_v25 = vpop.eup %1253 }
 0x156   :  { %v930_v31 = vmul.f32 0.6931472, %v1254_v25  ;;  %v1027_v25 = vmul.f32 2.0, %v1524_v17 }
 0x157   :  { %1255 = vlog2.f32 %v1094_v23 }
 0x158   :  { %1257 = vlog2.f32 %v1079_v24 }
 0x15c   :  { %v836_v26 = vpop.xlane.xlu2 %835  ;;  %v838_v30 = vpop.xlane.xlu0 %837 }
 0x15d   :  { %v1256_v27 = vpop.eup %1255  ;;  %v1095_v28 = vadd.f32 -242.71828, %v836_v26  ;;  %v1096_v36 = vadd.f32 -242.71828, %v838_v30 }
 0x15e   :  { %v978_v33 = vmul.f32 0.6931472, %v1256_v27  ;;  %v1258_v37 = vpop.eup %1257 }
 0x15f   :  { %1259 = vlog2.f32 %v1095_v28  ;;  %v932_v41 = vmul.f32 0.6931472, %v1258_v37 }
 0x160   :  { %v1006_v35 = vadd.f32 %v978_v33, %v930_v31  ;;  %1261 = vlog2.f32 %v1096_v36  ;;  %v1028_v33 = vmul.f32 2.0, %v1526_v32 }
 0x162   :  { %v1038_v38 = vsub.f32 %v1006_v35, %v1022_v34 }
 0x164   :  { %1055 = vst.msk [vmem:[%s1618_s4 + $0x18] sm:$0xff] %vm1051_vm0, %v1038_v38  ;;  %v790_v39 = vpop.xlane.xlu2 %789  ;;  %v792_v45 = vpop.xlane.xlu0 %791 }
 0x165   :  { %v1260_v40 = vpop.eup %1259  ;;  %v840_v42 = vpop.xlane.xlu1 %839  ;;  %v1080_v43 = vadd.f32 -242.71828, %v790_v39  ;;  %v1081_v50 = vadd.f32 -242.71828, %v792_v45 }
 0x166   :  { %v980_v46 = vmul.f32 0.6931472, %v1260_v40  ;;  %v1097_v47 = vadd.f32 -242.71828, %v840_v42  ;;  %v1262_v54 = vpop.eup %1261 }
 0x167   :  { %1263 = vlog2.f32 %v1080_v43  ;;  %v982_v62 = vmul.f32 0.6931472, %v1262_v54 }
 0x168   :  { %v1007_v51 = vadd.f32 %v980_v46, %v932_v41  ;;  %1265 = vlog2.f32 %v1097_v47 }
 0x169   :  { %1267 = vlog2.f32 %v1081_v50 }
 0x16a   :  { %v1039_v55 = vsub.f32 %v1007_v51, %v1023_v44 }
 0x16c   :  { %1056 = vst.msk [vmem:[%s1618_s4 + $0x20] sm:$0xff] %vm1051_vm0, %v1039_v55 }
 0x16d   :  { %v1264_v56 = vpop.eup %1263  ;;  %v842_v63 = vpop.xlane.xlu2 %841 }
 0x16e   :  { %v794_v59 = vpop.xlane.xlu1 %793  ;;  %v1266_v60 = vpop.eup %1265  ;;  %v934_v61 = vmul.f32 0.6931472, %v1264_v56  ;;  %v1098_v2 = vadd.f32 -242.71828, %v842_v63 }
 0x16f   :  { %v1082_v3 = vadd.f32 -242.71828, %v794_v59  ;;  %v1268_v4 = vpop.eup %1267  ;;  %v984_v49 = vmul.f32 0.6931472, %v1266_v60 }
 0x170   :  { %v1008_v58 = vadd.f32 %v982_v62, %v934_v61  ;;  %v936_v8 = vmul.f32 0.6931472, %v1268_v4  ;;  %1269 = vlog2.f32 %v1098_v2 }
 0x171   :  { %1271 = vlog2.f32 %v1082_v3 }
 0x172   :  { %v1040_v21 = vsub.f32 %v1008_v58, %v1024_v57  ;;  %v1009_v52 = vadd.f32 %v984_v49, %v936_v8 }
 0x174   :  { %1057 = vst.msk [vmem:[%s1618_s4 + $0x28] sm:$0xff] %vm1051_vm0, %v1040_v21  ;;  %v1041_v53 = vsub.f32 %v1009_v52, %v1025_v9 }
 0x175   :  { %v844_v7 = vpop.xlane.xlu0 %843  ;;  %v796_v10 = vpop.xlane.xlu2 %795 }
 0x176   :  { %v1270_v11 = vpop.eup %1269  ;;  %1058 = vst.msk [vmem:[%s1618_s4 + $0x30] sm:$0xff] %vm1051_vm0, %v1041_v53  ;;  %v1099_v48 = vadd.f32 -242.71828, %v844_v7  ;;  %v1083_v13 = vadd.f32 -242.71828, %v796_v10 }
 0x177   :  { %v1272_v14 = vpop.eup %1271  ;;  %v986_v12 = vmul.f32 0.6931472, %v1270_v11 }
 0x178   :  { %v938_v16 = vmul.f32 0.6931472, %v1272_v14  ;;  %1273 = vlog2.f32 %v1099_v48 }
 0x179   :  { %1275 = vlog2.f32 %v1083_v13 }
 0x17a   :  { %v1010_v6 = vadd.f32 %v986_v12, %v938_v16 }
 0x17c   :  { %v1042_v18 = vsub.f32 %v1010_v6, %v1026_v5 }
 0x17d   :  { %v846_v19 = vpop.xlane.xlu1 %845  ;;  %v798_v0 = vpop.xlane.xlu0 %797 }
 0x17e   :  { %v1274_v1 = vpop.eup %1273  ;;  %1059 = vst.msk [vmem:[%s1618_s4 + $0x38] sm:$0xff] %vm1051_vm0, %v1042_v18  ;;  %v1100_v20 = vadd.f32 -242.71828, %v846_v19  ;;  %v1084_v29 = vadd.f32 -242.71828, %v798_v0 }
 0x17f   :  { %v1276_v22 = vpop.eup %1275  ;;  %v988_v23 = vmul.f32 0.6931472, %v1274_v1 }
 0x180   :  { %v940_v24 = vmul.f32 0.6931472, %v1276_v22  ;;  %1277 = vlog2.f32 %v1100_v20 }
 0x181   :  { %1279 = vlog2.f32 %v1084_v29 }
 0x182   :  { %v1011_v15 = vadd.f32 %v988_v23, %v940_v24 }
 0x184   :  { %v1043_v26 = vsub.f32 %v1011_v15, %v1027_v25 }
 0x185   :  { %v848_v35 = vpop.xlane.xlu2 %847  ;;  %v800_v37 = vpop.xlane.xlu1 %799 }
 0x186   :  { %v1278_v27 = vpop.eup %1277  ;;  %1060 = vst.msk [vmem:[%s1618_s4 + $0x40] sm:$0xff] %vm1051_vm0, %v1043_v26  ;;  %v1101_v45 = vadd.f32 -242.71828, %v848_v35  ;;  %v1085_v54 = vadd.f32 -242.71828, %v800_v37 }
 0x187   :  { %v1280_v30 = vpop.eup %1279  ;;  %v990_v28 = vmul.f32 0.6931472, %v1278_v27 }
 0x188   :  { %v942_v31 = vmul.f32 0.6931472, %v1280_v30 }
 0x18a   :  { %v1012_v34 = vadd.f32 %v990_v28, %v942_v31 }
 0x18c   :  { %v1044_v36 = vsub.f32 %v1012_v34, %v1028_v33 }
 0x18d   :  { %v850_v17 = vpop.xlane.xlu0 %849  ;;  %v802_v38 = vpop.xlane.xlu2 %801 }
 0x18e   :  { %1061 = vst.msk [vmem:[%s1618_s4 + $0x48] sm:$0xff] %vm1051_vm0, %v1044_v36  ;;  %v1102_v32 = vadd.f32 -242.71828, %v850_v17  ;;  %v1086_v47 = vadd.f32 -242.71828, %v802_v38 }
 0x195   :  { %v852_v39 = vpop.xlane.xlu1 %851  ;;  %v804_v40 = vpop.xlane.xlu0 %803 }
 0x196   :  { %v1103_v41 = vadd.f32 -242.71828, %v852_v39  ;;  %v1087_v42 = vadd.f32 -242.71828, %v804_v40 }
 0x198   :  { %1281 = vlog2.f32 %v1103_v41 }
 0x199   :  { %1283 = vlog2.f32 %v1087_v42 }
 0x19a   :  { %1285 = vlog2.f32 %v1101_v45 }
 0x19b   :  { %1287 = vlog2.f32 %v1102_v32 }
 0x19c   :  { %1289 = vlog2.f32 %v1086_v47 }
 0x19d   :  { %v854_v43 = vpop.xlane.xlu2 %853  ;;  %v806_v46 = vpop.xlane.xlu1 %805  ;;  %1291 = vlog2.f32 %v1085_v54 }
 0x19e   :  { %v1282_v51 = vpop.eup %1281  ;;  %v1104_v56 = vadd.f32 -242.71828, %v854_v43  ;;  %v1088_v2 = vadd.f32 -242.71828, %v806_v46 }
 0x19f   :  { %v1284_v55 = vpop.eup %1283  ;;  %v996_v62 = vmul.f32 0.6931472, %v1282_v51 }
 0x1a0   :  { %v948_v63 = vmul.f32 0.6931472, %v1284_v55  ;;  %v1286_v61 = vpop.eup %1285  ;;  %1293 = vlog2.f32 %v1104_v56 }
 0x1a1   :  { %v1288_v49 = vpop.eup %1287  ;;  %v992_v13 = vmul.f32 0.6931472, %v1286_v61 }
 0x1a2   :  { %v1015_v58 = vadd.f32 %v996_v62, %v948_v63  ;;  %v1290_v21 = vpop.eup %1289  ;;  %v994_v10 = vmul.f32 0.6931472, %v1288_v49 }
 0x1a3   :  { %v1292_v53 = vpop.eup %1291  ;;  %v946_v11 = vmul.f32 0.6931472, %v1290_v21 }
 0x1a4   :  { %v944_v14 = vmul.f32 0.6931472, %v1292_v53 }
 0x1a5   :  { %v856_v50 = vpop.xlane.xlu0 %855  ;;  %v808_v44 = vpop.xlane.xlu2 %807  ;;  %v1014_v19 = vadd.f32 %v994_v10, %v946_v11 }
 0x1a6   :  { %v1105_v59 = vadd.f32 -242.71828, %v856_v50  ;;  %v1089_v60 = vadd.f32 -242.71828, %v808_v44  ;;  %v1294_v48 = vpop.eup %1293  ;;  %v1013_v22 = vadd.f32 %v992_v13, %v944_v14 }
 0x1a7   :  { %v998_v33 = vmul.f32 0.6931472, %v1294_v48 }
 0x1a8   :  { %1295 = vlog2.f32 %v1105_v59 }
 0x1a9   :  { %1297 = vlog2.f32 %v1089_v60 }
 0x1ad   :  { %v858_v3 = vpop.xlane.xlu1 %857  ;;  %v900_v4 = vpop.xlane.xlu2 %899 }
 0x1ae   :  { %v1106_v57 = vadd.f32 -242.71828, %v858_v3  ;;  %v1031_v8 = vmul.f32 2.0, %v900_v4  ;;  %v810_v9 = vpop.xlane.xlu0 %809  ;;  %v1296_v12 = vpop.eup %1295 }
 0x1af   :  { %v1090_v52 = vadd.f32 -242.71828, %v810_v9  ;;  %v1298_v16 = vpop.eup %1297  ;;  %v1000_v30 = vmul.f32 0.6931472, %v1296_v12 }
 0x1b0   :  { %1299 = vlog2.f32 %v1106_v57  ;;  %v1047_v7 = vsub.f32 %v1015_v58, %v1031_v8  ;;  %v952_v28 = vmul.f32 0.6931472, %v1298_v16 }
 0x1b1   :  { %1301 = vlog2.f32 %v1090_v52 }
 0x1b2   :  { %1303 = vlog2.f32 %v1088_v2  ;;  %1064 = vst.msk [vmem:[%s1618_s4 + $0x60] sm:$0xff] %vm1051_vm0, %v1047_v7  ;;  %v1017_v17 = vadd.f32 %v1000_v30, %v952_v28 }
 0x1b5   :  { %v898_v5 = vpop.xlane.xlu1 %897  ;;  %v906_v6 = vpop.xlane.xlu2 %905 }
 0x1b6   :  { %v1300_v18 = vpop.eup %1299  ;;  %v1030_v0 = vmul.f32 2.0, %v898_v5  ;;  %v896_v1 = vpop.xlane.xlu0 %895  ;;  %v1034_v26 = vmul.f32 2.0, %v906_v6 }
 0x1b7   :  { %v1302_v20 = vpop.eup %1301  ;;  %v1002_v29 = vmul.f32 0.6931472, %v1300_v18  ;;  %v1029_v23 = vmul.f32 2.0, %v896_v1 }
 0x1b8   :  { %v1304_v24 = vpop.eup %1303  ;;  %v954_v25 = vmul.f32 0.6931472, %v1302_v20  ;;  %v1046_v15 = vsub.f32 %v1014_v19, %v1030_v0 }
 0x1b9   :  { %v1045_v27 = vsub.f32 %v1013_v22, %v1029_v23  ;;  %v950_v34 = vmul.f32 0.6931472, %v1304_v24 }
 0x1ba   :  { %1063 = vst.msk [vmem:[%s1618_s4 + $0x58] sm:$0xff] %vm1051_vm0, %v1046_v15  ;;  %v1018_v31 = vadd.f32 %v1002_v29, %v954_v25 }
 0x1bb   :  { %1062 = vst.msk [vmem:[%s1618_s4 + $0x50] sm:$0xff] %vm1051_vm0, %v1045_v27  ;;  %v1016_v39 = vadd.f32 %v998_v33, %v950_v34 }
 0x1bc   :  { %v1050_v35 = vsub.f32 %v1018_v31, %v1034_v26 }
 0x1bd   :  { %v904_v36 = vpop.xlane.xlu1 %903 }
 0x1be   :  { %1067 = vst.msk [vmem:[%s1618_s4 + $0x78] sm:$0xff] %vm1051_vm0, %v1050_v35  ;;  %v1033_v37 = vmul.f32 2.0, %v904_v36  ;;  %v902_v38 = vpop.xlane.xlu0 %901 }
 0x1bf   :  { %v1032_v40 = vmul.f32 2.0, %v902_v38 }
 0x1c0   :  { %v1049_v41 = vsub.f32 %v1017_v17, %v1033_v37 }
 0x1c1   :  { %v1048_v42 = vsub.f32 %v1016_v39, %v1032_v40 }
 0x1c2   :  { %1066 = vst.msk [vmem:[%s1618_s4 + $0x70] sm:$0xff] %vm1051_vm0, %v1049_v41 }
 0x1c3   :  { %1065 = vst.msk [vmem:[%s1618_s4 + $0x68] sm:$0xff] %vm1051_vm0, %v1048_v42 }
 0x1c4   :  { %1072 = vsyncpa [#allocation5], 1 }
 0x1c5   :  { %1073 = vsyncpa [#allocation7], 1 }
 0x1c6   :  { %1074 = vsyncpa [#allocation10], 1 }

</bundles_post_ra>
